<compile_context>
chip_gen: v7x
topology: tpu7x:2x2x1
jax: 0.10.0
libtpu: 0.0.40
codegen_flags: <defaults>
</compile_context>

<pallas_src>
import jax
import jax.numpy as jnp
from jax import lax
from jax.experimental import pallas as pl
from jax.experimental.pallas import tpu as pltpu


def _make_kernel(N, C_in, C_conv, HO, WO, pad):
    S = HO * WO          # per-image output spatial size
    NS = N * S           # lane axis (flattened batch + spatial)

    def kernel(xp_ref, wc_ref, sc_ref, sh_ref, o_ref):
        # xp_ref: (4, C_in, pad + N*S)   zero-left-padded phase planes,
        #         xp[2p+q, c, pad + n*S + oh*WO + ow] = x[n, c, 2*oh+p, 2*ow+q]
        # wc_ref: (C_conv, 9*C_in)       conv weights, column = (kh*3+kw)*C_in + ci
        # sc_ref: (C_out, 1)             fused BN scale        (C_out = C_conv + C_in)
        # sh_ref: (C_out, 1)             fused conv-bias + BN shift
        # o_ref : (C_out, N*S)
        lane = lax.broadcasted_iota(jnp.int32, (1, NS), 1)
        ow_ok = (lane % WO) != 0         # False on the ow == 0 border columns
        oh_ok = (lane % S) >= WO         # False on the oh == 0 border rows

        def plane(phase, dh, dw):
            # value at output pixel (n, oh, ow) = x_phase[n, oh - dh, ow - dw], 0 outside
            start = pad - (dh * WO + dw)
            p = xp_ref[phase, :, start:start + NS]           # (C_in, N*S)
            if dh and dw:
                p = jnp.where(jnp.logical_and(oh_ok, ow_ok), p, 0.0)
            elif dh:
                p = jnp.where(oh_ok, p, 0.0)
            elif dw:
                p = jnp.where(ow_ok, p, 0.0)
            return p

        ee = plane(0, 0, 0)   # even row, even col
        eo = plane(1, 0, 0)   # even row, odd  col
        oe = plane(2, 0, 0)   # odd  row, even col
        oo = plane(3, 0, 0)   # odd  row, odd  col

        # 3x3 stride-2 pad-1 conv taps, row-major (kh, kw), stacked into an
        # im2col-style matrix so the whole channel mix is one MXU matmul.
        taps = jnp.concatenate([
            plane(3, 1, 1),   # (0, 0): x[2oh-1, 2ow-1]
            plane(2, 1, 0),   # (0, 1): x[2oh-1, 2ow  ]
            plane(3, 1, 0),   # (0, 2): x[2oh-1, 2ow+1]
            plane(1, 0, 1),   # (1, 0): x[2oh  , 2ow-1]
            ee,               # (1, 1): x[2oh  , 2ow  ]
            eo,               # (1, 2): x[2oh  , 2ow+1]
            plane(3, 0, 1),   # (2, 0): x[2oh+1, 2ow-1]
            oe,               # (2, 1): x[2oh+1, 2ow  ]
            oo,               # (2, 2): x[2oh+1, 2ow+1]
        ], axis=0)                                           # (9*C_in, N*S)

        conv = jnp.dot(wc_ref[...], taps,
                       preferred_element_type=jnp.float32,
                       precision=lax.Precision.HIGHEST)      # (C_conv, N*S) on the MXU

        # 2x2 stride-2 max pool == elementwise max of the four phases (VPU).
        pooled = jnp.maximum(jnp.maximum(ee, eo), jnp.maximum(oe, oo))  # (C_in, N*S)

        full = jnp.concatenate([conv, pooled], axis=0)       # (C_out, N*S)

        # fused conv-bias + eval-mode BatchNorm + ReLU, one dense lane-wide store.
        o_ref[...] = jnp.maximum(full * sc_ref[...] + sh_ref[...], 0.0)

    return kernel


def downsampler_block_pallas(x, conv_w, conv_b, bn_gamma, bn_beta, bn_mean,
                             bn_var, eps=1e-3):
    """DownsamplerBlock forward (eval-mode BatchNorm), x in NCHW float32."""
    N, C_in, H, W = x.shape
    C_conv = conv_w.shape[0]
    C_out = C_conv + C_in
    HO, WO = H // 2, W // 2
    S = HO * WO
    NS = N * S
    pad = WO + 1                       # max tap shift along the flattened lane axis

    # ---- layout plumbing in plain JAX (small, fused by XLA) ----
    # 2x2 phase decomposition: xp[2p+q, c, n*S + oh*WO + ow] = x[n, c, 2oh+p, 2ow+q]
    xp = x.reshape(N, C_in, HO, 2, WO, 2).transpose(3, 5, 1, 0, 2, 4)
    xp = xp.reshape(4, C_in, NS)
    xp = jnp.pad(xp, ((0, 0), (0, 0), (pad, 0)))             # left zero-pad the lane axis

    # conv weight (C_conv, C_in, 3, 3) -> (C_conv, 9*C_in), col = (kh*3+kw)*C_in + ci
    wc = conv_w.transpose(0, 2, 3, 1).reshape(C_conv, 9 * C_in)

    # fold conv bias + eval-mode BatchNorm into one per-channel scale / shift.
    # TODO(synk): training-mode BatchNorm (batch statistics) not implemented.
    scale = bn_gamma / jnp.sqrt(bn_var + eps)                 # (C_out,)
    shift = bn_beta - bn_mean * scale                         # (C_out,)
    shift = shift.at[:C_conv].add(conv_b * scale[:C_conv])    # conv bias folded into BN
    sc = scale.reshape(C_out, 1)
    sh = shift.reshape(C_out, 1)

    vmem = pl.BlockSpec(memory_space=pltpu.MemorySpace.VMEM)
    out_flat = pl.pallas_call(
        _make_kernel(N, C_in, C_conv, HO, WO, pad),
        out_shape=jax.ShapeDtypeStruct((C_out, NS), jnp.float32),
        in_specs=[vmem, vmem, vmem, vmem],
        out_specs=vmem,
    )(xp, wc, sc, sh)

    # (C_out, N, HO, WO) -> NCHW; tiny transpose handled by XLA outside the kernel.
    return out_flat.reshape(C_out, N, HO, WO).transpose(1, 0, 2, 3)


def reference_nchw(x, conv_w, conv_b, gamma, beta, mean, var, eps=1e-3):
    """Pure-JAX NCHW reference matching the PyTorch forward (eval mode)."""
    conv = lax.conv_general_dilated(
        x, conv_w, window_strides=(2, 2), padding=((1, 1), (1, 1)),
        dimension_numbers=("NCHW", "OIHW", "NCHW"),
        precision=lax.Precision.HIGHEST)
    conv = conv + conv_b[None, :, None, None]
    N, C, H, W = x.shape
    pool = x.reshape(N, C, H // 2, 2, W // 2, 2).max(axis=(3, 5))
    out = jnp.concatenate([conv, pool], axis=1)
    scale = gamma / jnp.sqrt(var + eps)
    shift = beta - mean * scale
    out = out * scale[None, :, None, None] + shift[None, :, None, None]
    return jnp.maximum(out, 0.0)


if __name__ == "__main__":
    key = jax.random.PRNGKey(0)
    ks = jax.random.split(key, 8)

    N, C_in, H, W = 2, 4, 16, 16
    C_out = 16                       # DownsamplerBlock(ninput=4, noutput=16)
    C_conv = C_out - C_in
    eps = 1e-3                       # BatchNorm2d(eps=0.001)

    # Deterministic parameters (PyTorch Conv2d weight layout: (Cout, Cin, kH, kW))
    conv_w = 0.2 * jax.random.normal(ks[0], (C_conv, C_in, 3, 3), jnp.float32)
    conv_b = 0.1 * jax.random.normal(ks[1], (C_conv,), jnp.float32)
    gamma = 1.0 + 0.1 * jax.random.normal(ks[2], (C_out,), jnp.float32)
    beta = 0.1 * jax.random.normal(ks[3], (C_out,), jnp.float32)
    mean = 0.1 * jax.random.normal(ks[4], (C_out,), jnp.float32)
    var = 0.5 + jnp.abs(jax.random.normal(ks[5], (C_out,), jnp.float32))
    x = jax.random.normal(ks[6], (N, C_in, H, W), jnp.float32)

    out = downsampler_block_pallas(x, conv_w, conv_b, gamma, beta, mean, var, eps)
    out = jax.block_until_ready(out)

    ref = reference_nchw(x, conv_w, conv_b, gamma, beta, mean, var, eps)
    ref = jax.block_until_ready(ref)

    assert out.shape == (N, C_out, H // 2, W // 2)
    max_err = float(jnp.max(jnp.abs(out - ref)))
    assert jnp.allclose(out, ref, atol=1e-4, rtol=1e-4), max_err
    print("KERNEL_OK")
</pallas_src>

<mosaic_0001>
module attributes {stable_mosaic.version = 11 : i64} {
  func.func @kernel(%arg0: memref<4x4x137xf32, #tpu.memory_space<vmem>>, %arg1: memref<12x36xf32, #tpu.memory_space<vmem>>, %arg2: memref<16x1xf32, #tpu.memory_space<vmem>>, %arg3: memref<16x1xf32, #tpu.memory_space<vmem>>, %arg4: memref<16x128xf32, #tpu.memory_space<vmem>>) attributes {dimension_semantics = [], scalar_prefetch = 0 : i64, scratch_operands = 0 : i64, tpu.core_type = #tpu.core_type<tc>} {
    %0 = tpu.iota {dimensions = array<i32: 1>} : vector<1x128xi32>
    %c8_i32 = arith.constant 8 : i32
    %c0_i32 = arith.constant 0 : i32
    %1 = arith.cmpi eq, %c8_i32, %c0_i32 : i32
    %c1_i32 = arith.constant 1 : i32
    %2 = arith.select %1, %c1_i32, %c8_i32 : i32
    %3 = vector.broadcast %2 : i32 to vector<1x128xi32>
    %4 = arith.remsi %0, %3 : vector<1x128xi32>
    %c0_i32_0 = arith.constant 0 : i32
    %5 = vector.broadcast %c0_i32_0 : i32 to vector<1x128xi32>
    %6 = arith.cmpi ne, %4, %5 : vector<1x128xi32>
    %c0_i32_1 = arith.constant 0 : i32
    %7 = vector.broadcast %c0_i32_1 : i32 to vector<1x128xi32>
    %8 = arith.cmpi slt, %4, %7 : vector<1x128xi32>
    %c0_i32_2 = arith.constant 0 : i32
    %9 = arith.cmpi slt, %2, %c0_i32_2 : i32
    %10 = vector.broadcast %9 : i1 to vector<1x128xi1>
    %11 = vector.broadcast %10 : vector<1x128xi1> to vector<1x128xi1>
    %12 = arith.xori %8, %11 : vector<1x128xi1>
    %13 = arith.andi %12, %6 : vector<1x128xi1>
    %14 = vector.broadcast %2 : i32 to vector<1x128xi32>
    %15 = arith.addi %4, %14 : vector<1x128xi32>
    %16 = arith.select %13, %15, %4 : vector<1x128xi1>, vector<1x128xi32>
    %c0_i32_3 = arith.constant 0 : i32
    %17 = vector.broadcast %c0_i32_3 : i32 to vector<1x128xi32>
    %18 = arith.cmpi ne, %16, %17 : vector<1x128xi32>
    %c64_i32 = arith.constant 64 : i32
    %c0_i32_4 = arith.constant 0 : i32
    %19 = arith.cmpi eq, %c64_i32, %c0_i32_4 : i32
    %c1_i32_5 = arith.constant 1 : i32
    %20 = arith.select %19, %c1_i32_5, %c64_i32 : i32
    %21 = vector.broadcast %20 : i32 to vector<1x128xi32>
    %22 = arith.remsi %0, %21 : vector<1x128xi32>
    %c0_i32_6 = arith.constant 0 : i32
    %23 = vector.broadcast %c0_i32_6 : i32 to vector<1x128xi32>
    %24 = arith.cmpi ne, %22, %23 : vector<1x128xi32>
    %c0_i32_7 = arith.constant 0 : i32
    %25 = vector.broadcast %c0_i32_7 : i32 to vector<1x128xi32>
    %26 = arith.cmpi slt, %22, %25 : vector<1x128xi32>
    %c0_i32_8 = arith.constant 0 : i32
    %27 = arith.cmpi slt, %20, %c0_i32_8 : i32
    %28 = vector.broadcast %27 : i1 to vector<1x128xi1>
    %29 = vector.broadcast %28 : vector<1x128xi1> to vector<1x128xi1>
    %30 = arith.xori %26, %29 : vector<1x128xi1>
    %31 = arith.andi %30, %24 : vector<1x128xi1>
    %32 = vector.broadcast %20 : i32 to vector<1x128xi32>
    %33 = arith.addi %22, %32 : vector<1x128xi32>
    %34 = arith.select %31, %33, %22 : vector<1x128xi1>, vector<1x128xi32>
    %c8_i32_9 = arith.constant 8 : i32
    %35 = vector.broadcast %c8_i32_9 : i32 to vector<1x128xi32>
    %36 = arith.cmpi sge, %34, %35 : vector<1x128xi32>
    %c0 = arith.constant 0 : index
    %c0_10 = arith.constant 0 : index
    %c9 = arith.constant 9 : index
    %37 = vector.load %arg0[%c0, %c0_10, %c9] : memref<4x4x137xf32, #tpu.memory_space<vmem>>, vector<1x4x128xf32>
    %38 = vector.shape_cast %37 : vector<1x4x128xf32> to vector<4x128xf32>
    %c1 = arith.constant 1 : index
    %c0_11 = arith.constant 0 : index
    %c9_12 = arith.constant 9 : index
    %39 = vector.load %arg0[%c1, %c0_11, %c9_12] : memref<4x4x137xf32, #tpu.memory_space<vmem>>, vector<1x4x128xf32>
    %40 = vector.shape_cast %39 : vector<1x4x128xf32> to vector<4x128xf32>
    %c2 = arith.constant 2 : index
    %c0_13 = arith.constant 0 : index
    %c9_14 = arith.constant 9 : index
    %41 = vector.load %arg0[%c2, %c0_13, %c9_14] : memref<4x4x137xf32, #tpu.memory_space<vmem>>, vector<1x4x128xf32>
    %42 = vector.shape_cast %41 : vector<1x4x128xf32> to vector<4x128xf32>
    %c3 = arith.constant 3 : index
    %c0_15 = arith.constant 0 : index
    %c9_16 = arith.constant 9 : index
    %43 = vector.load %arg0[%c3, %c0_15, %c9_16] : memref<4x4x137xf32, #tpu.memory_space<vmem>>, vector<1x4x128xf32>
    %44 = vector.shape_cast %43 : vector<1x4x128xf32> to vector<4x128xf32>
    %c3_17 = arith.constant 3 : index
    %c0_18 = arith.constant 0 : index
    %c0_19 = arith.constant 0 : index
    %45 = vector.load %arg0[%c3_17, %c0_18, %c0_19] : memref<4x4x137xf32, #tpu.memory_space<vmem>>, vector<1x4x128xf32>
    %46 = vector.shape_cast %45 : vector<1x4x128xf32> to vector<4x128xf32>
    %47 = arith.andi %36, %18 : vector<1x128xi1>
    %cst = arith.constant 0.000000e+00 : f32
    %48 = vector.shape_cast %47 : vector<1x128xi1> to vector<1x128xi1>
    %49 = vector.broadcast %48 : vector<1x128xi1> to vector<4x128xi1>
    %50 = vector.broadcast %cst : f32 to vector<4x128xf32>
    %51 = arith.select %49, %46, %50 : vector<4x128xi1>, vector<4x128xf32>
    %c2_20 = arith.constant 2 : index
    %c0_21 = arith.constant 0 : index
    %c1_22 = arith.constant 1 : index
    %52 = vector.load %arg0[%c2_20, %c0_21, %c1_22] : memref<4x4x137xf32, #tpu.memory_space<vmem>>, vector<1x4x128xf32>
    %53 = vector.shape_cast %52 : vector<1x4x128xf32> to vector<4x128xf32>
    %cst_23 = arith.constant 0.000000e+00 : f32
    %54 = vector.shape_cast %36 : vector<1x128xi1> to vector<1x128xi1>
    %55 = vector.broadcast %54 : vector<1x128xi1> to vector<4x128xi1>
    %56 = vector.broadcast %cst_23 : f32 to vector<4x128xf32>
    %57 = arith.select %55, %53, %56 : vector<4x128xi1>, vector<4x128xf32>
    %c3_24 = arith.constant 3 : index
    %c0_25 = arith.constant 0 : index
    %c1_26 = arith.constant 1 : index
    %58 = vector.load %arg0[%c3_24, %c0_25, %c1_26] : memref<4x4x137xf32, #tpu.memory_space<vmem>>, vector<1x4x128xf32>
    %59 = vector.shape_cast %58 : vector<1x4x128xf32> to vector<4x128xf32>
    %cst_27 = arith.constant 0.000000e+00 : f32
    %60 = vector.shape_cast %36 : vector<1x128xi1> to vector<1x128xi1>
    %61 = vector.broadcast %60 : vector<1x128xi1> to vector<4x128xi1>
    %62 = vector.broadcast %cst_27 : f32 to vector<4x128xf32>
    %63 = arith.select %61, %59, %62 : vector<4x128xi1>, vector<4x128xf32>
    %c1_28 = arith.constant 1 : index
    %c0_29 = arith.constant 0 : index
    %c8 = arith.constant 8 : index
    %64 = vector.load %arg0[%c1_28, %c0_29, %c8] : memref<4x4x137xf32, #tpu.memory_space<vmem>>, vector<1x4x128xf32>
    %65 = vector.shape_cast %64 : vector<1x4x128xf32> to vector<4x128xf32>
    %cst_30 = arith.constant 0.000000e+00 : f32
    %66 = vector.shape_cast %18 : vector<1x128xi1> to vector<1x128xi1>
    %67 = vector.broadcast %66 : vector<1x128xi1> to vector<4x128xi1>
    %68 = vector.broadcast %cst_30 : f32 to vector<4x128xf32>
    %69 = arith.select %67, %65, %68 : vector<4x128xi1>, vector<4x128xf32>
    %c3_31 = arith.constant 3 : index
    %c0_32 = arith.constant 0 : index
    %c8_33 = arith.constant 8 : index
    %70 = vector.load %arg0[%c3_31, %c0_32, %c8_33] : memref<4x4x137xf32, #tpu.memory_space<vmem>>, vector<1x4x128xf32>
    %71 = vector.shape_cast %70 : vector<1x4x128xf32> to vector<4x128xf32>
    %cst_34 = arith.constant 0.000000e+00 : f32
    %72 = vector.shape_cast %18 : vector<1x128xi1> to vector<1x128xi1>
    %73 = vector.broadcast %72 : vector<1x128xi1> to vector<4x128xi1>
    %74 = vector.broadcast %cst_34 : f32 to vector<4x128xf32>
    %75 = arith.select %73, %71, %74 : vector<4x128xi1>, vector<4x128xf32>
    %76 = tpu.concatenate %51, %57, %63, %69, %38, %40, %75, %42, %44 in 0 : vector<4x128xf32>, vector<4x128xf32>, vector<4x128xf32>, vector<4x128xf32>, vector<4x128xf32>, vector<4x128xf32>, vector<4x128xf32>, vector<4x128xf32>, vector<4x128xf32> -> vector<36x128xf32>
    %c0_35 = arith.constant 0 : index
    %c0_36 = arith.constant 0 : index
    %77 = vector.load %arg1[%c0_35, %c0_36] : memref<12x36xf32, #tpu.memory_space<vmem>>, vector<12x36xf32>
    %cst_37 = arith.constant dense<0.000000e+00> : vector<12x128xf32>
    %78 = tpu.matmul %77, %76, %cst_37 {dimension_numbers = #tpu.dot_dimension_numbers<[1], [0], [0], [1], [0, 0, 1, 1], [], []>, precision = #tpu.contract_precision<fp32>} : vector<12x36xf32>, vector<36x128xf32>, vector<12x128xf32> -> vector<12x128xf32>
    %79 = arith.maximumf %38, %40 : vector<4x128xf32>
    %80 = arith.maximumf %42, %44 : vector<4x128xf32>
    %81 = arith.maximumf %79, %80 : vector<4x128xf32>
    %82 = tpu.concatenate %78, %81 in 0 : vector<12x128xf32>, vector<4x128xf32> -> vector<16x128xf32>
    %c0_38 = arith.constant 0 : index
    %c0_39 = arith.constant 0 : index
    %83 = vector.load %arg2[%c0_38, %c0_39] : memref<16x1xf32, #tpu.memory_space<vmem>>, vector<16x1xf32>
    %84 = vector.broadcast %83 : vector<16x1xf32> to vector<16x128xf32>
    %85 = arith.mulf %82, %84 : vector<16x128xf32>
    %c0_40 = arith.constant 0 : index
    %c0_41 = arith.constant 0 : index
    %86 = vector.load %arg3[%c0_40, %c0_41] : memref<16x1xf32, #tpu.memory_space<vmem>>, vector<16x1xf32>
    %87 = vector.broadcast %86 : vector<16x1xf32> to vector<16x128xf32>
    %88 = arith.addf %85, %87 : vector<16x128xf32>
    %cst_42 = arith.constant 0.000000e+00 : f32
    %89 = vector.broadcast %cst_42 : f32 to vector<16x128xf32>
    %90 = arith.maximumf %88, %89 : vector<16x128xf32>
    %c0_43 = arith.constant 0 : index
    %c0_44 = arith.constant 0 : index
    %91 = vector.load %arg4[%c0_43, %c0_44] : memref<16x128xf32, #tpu.memory_space<vmem>>, vector<16x128xf32>
    tpu.vector_store %arg4[%c0_43, %c0_44], %90 {strides = array<i32>} : memref<16x128xf32, #tpu.memory_space<vmem>>, vector<16x128xf32>,
    return
  }
}

</mosaic_0001>

<bundles_post_ra>
// kernel: tpu_custom_call.1
= control target key start
LH: loop header
LB: loop body
LE: loop exit
PB: predicated region body
PF: predicated region fallthrough
CT: control target
= control target key end

     0   :  { %9 = vsyncpa [#allocation3], 0  ;;  %s1185_s0 = inlined_call_operand.vmem [shape: f32[4,4,137], index: 0, kind: input, shape index: {}]   ;;  %s1186_s1 = inlined_call_operand.hbm [shape: f32[12,36], index: 1, kind: input, shape index: {}]   ;;  %s1187_s2 = inlined_call_operand.vmem [shape: f32[16,1], index: 2, kind: input, shape index: {}]   ;;  %s1188_s3 = inlined_call_operand.vmem [shape: f32[16,1], index: 3, kind: input, shape index: {}]   ;;  %s1189_s4 = inlined_call_operand.hbm [shape: f32[16,128], index: 4, kind: output, shape index: {}]  }
   0x1   :  { %10 = vsyncpa [#allocation4], 0  ;;  %s1010_s15 = smov [#allocation2]   ;;  %s962_s19 = scalar_lea.hbm %s1186_s1, 256 }
   0x2   :  { %s18_s16 = sshll.u32 %s1010_s15, 4  ;;  %p963_p0 = scmp.ne.s32.totalorder %s1186_s1, %s962_s19  ;;  %s19_s16 = int_to_ptr.vmem [resolvable:$true] %s18_s16 }
   0x3   :  { %p966_p1 = scmp.lt.u32.totalorder %s962_s19, %s1186_s1 }
   0x5   :  { %p968_p2 = pnand %p966_p1, %p963_p0 }
   0x7   :  { %971 = shalt.err (!%p968_p2)
}
   0x8   :  { %s972_s24 = scalar_lea.vmem %s19_s16, 256  ;;  %p977_p4 = scmp.lt.s32.totalorder %s19_s16, %s19_s16 }
   0x9   :  { %p973_p3 = scmp.ne.s32.totalorder %s19_s16, %s972_s24  ;;  %p978_p5 = scmp.lt.s32.totalorder %s972_s24, %s972_s24 }
   0xb   :  { %p979_p6 = por %p978_p5, %p977_p4 }
   0xd   :  { %p980_p7 = pnand %p979_p6, %p973_p3 }
   0xf   :  { %983 = shalt.err (!%p980_p7)
}
  0x10   :  { %s1011_s25 = smov 128   ;;  %s1012_s26 = smov 8  }
  0x11   :  { %24 = dma.hbm_to_vmem [thread:$0]  %s1186_s1, 256, %s19_s16, [#allocation3], %s1011_s25, %s1011_s25, %s1012_s26  }
  0x12   :  { %1006 = dma.done.wait [#allocation3], 256  }
  0x13   :  { %1007 = vsyncadd [#allocation3], 4294967040  ;;  %v765_v0 = vld [vmem:[%s1185_s0 + $0x10] sm:$0xff]  ;;  %v764_v1 = vld [vmem:[%s1185_s0 + $0x8] sm:$0xff]  ;;  %s1013_s7 = smov 127   ;;  %s1014_s8 = smov 120   ;;  %v32_v26 = vlaneseq }
  0x14   :  { %76 = vrot.lane.b32.xlu0 %v765_v0, %s1013_s7  ;;  %97 = vrot.lane.b32.xlu1 %v764_v1, %s1014_s8  ;;  %v96_v2 = vcombine.high %v764_v1, %v764_v1  ;;  %v766_v3 = vld [vmem:[%s1185_s0 + $0x18] sm:$0xff]  ;;  %v75_v4 = vcombine.high %v765_v0, %v765_v0  ;;  %v60_v6 = vld [vmem:[%s1185_s0] sm:$0xff]  ;;  %vm153_vm0 = vcmask 293888   ;;  %s1015_s12 = smov 119   ;;  %v127_v12 = vcombine.low %v764_v1, %v764_v1  ;;  %v152_v51 = vld [vmem:[#allocation2 + $0x8] sm:$0xf] }
  0x15   :  { %v85_v5 = vcombine.high %v766_v3, %v766_v3  ;;  %v151_v7 = vld [vmem:[#allocation2] sm:$0xff]  ;;  %v119_v8 = vcombine.high %v60_v6, %v60_v6  ;;  %v134_v15 = vcombine.low %v765_v0, %v765_v0  ;;  %v703_v17 = vmax.f32 %v60_v6, %v764_v1  ;;  %v716_v19 = vld [vmem:[%s1187_s2 + $0x8] sm:$0xff]  ;;  %v767_v38 = vld [vmem:[%s1185_s0 + $0x18] sm:$0xf]  ;;  %s1017_s0 = smov [#allocation5]  }
  0x16   :  { %v155_v9 = vsel %vm153_vm0, %v151_v7, 0  ;;  %v715_v18 = vld [vmem:[%s1187_s2] sm:$0xff]  ;;  %v704_v20 = vmax.f32 %v765_v0, %v766_v3  ;;  %v1016_v21 = vmov 0   ;;  %v730_v23 = vld [vmem:[%s1188_s3 + $0x8] sm:$0xff]  ;;  %v33_v27 = vand.u32 127, %v32_v26  ;;  %s752_s21 = sshll.u32 %s1017_s0, 4  ;;  %s753_s21 = int_to_ptr.vmem [resolvable:$true] %s752_s21 }
  0x17   :  { %v1071_v10 = vand.u32 4294901760, %v155_v9  ;;  %955 = vset.pattern.permute.xlu1 %v1016_v21  ;;  %954 = vset.pattern.permute.xlu0 %v1016_v21  ;;  %v729_v24 = vld [vmem:[%s1188_s3] sm:$0xff]  ;;  %vm101_vm1 = vcmask 982016   ;;  %vm80_vm4 = vcmask 1039360   ;;  %vm146_vm6 = vcmask 1043456   ;;  %s984_s22 = scalar_lea.vmem %s753_s21, 256  ;;  %p989_p9 = scmp.lt.s32.totalorder %s753_s21, %s753_s21 }
  0x18   :  { %86 = vrot.lane.b32.xlu0 %v766_v3, %s1013_s7  ;;  %99 = vrot.lane.b32.xlu1 %v96_v2, %s1014_s8  ;;  %v705_v22 = vmax.f32 %v703_v17, %v704_v20  ;;  %v38_v28 = vand.u32 7, %v33_v27  ;;  %v51_v31 = vand.u32 63, %v33_v27  ;;  %v158_v55 = vsel %vm153_vm0, %v152_v51, 0  ;;  %p985_p8 = scmp.ne.s32.totalorder %s753_s21, %s984_s22  ;;  %p990_p10 = scmp.lt.s32.totalorder %s984_s22, %s984_s22 }
  0x19   :  { %v1074_v11 = vsub.f32 %v155_v9, %v1071_v10  ;;  %vm124_vm7 = vcmask 973824   ;;  %v1129_v59 = vand.u32 4294901760, %v158_v55 }
  0x1a   :  { %v707_v25 = vcombine.low %v705_v22, %v705_v22  ;;  %vm1100_vm2 = vcmp.ne.s32.totalorder %v38_v28, 0  ;;  %vm1104_vm3 = vcmp.ge.s32.totalorder %v51_v31, 8  ;;  %p991_p11 = por %p990_p10, %p989_p9 }
  0x1b   :  { %v234_v13 = vand.u32 4294901760, %v1074_v11  ;;  %vm68_vm5 = vmand %vm1104_vm3, %vm1100_vm2 }
  0x1c   :  { %78 = vrot.lane.b32.xlu0 %v75_v4, %s1013_s7  ;;  %88 = vrot.lane.b32.xlu1 %v85_v5, %s1013_s7  ;;  %v71_v44 = vsel %vm68_vm5, %v767_v38, 0.0  ;;  %v1142_v4 = vsub.f32 %v158_v55, %v1129_v59  ;;  %p992_p12 = pnand %p991_p11, %p985_p8 }
  0x1d   :  { %v235_v14 = vsub.f32 %v1074_v11, %v234_v13  ;;  %859 = vmatprep.mubr.f32.mxu0 %v234_v13 }
  0x1f   :  { %v236_v16 = vand.u32 4294901760, %v235_v14 }
  0x20   :  { %105 = vrot.lane.b32.xlu0 %v766_v3, %s1014_s8  ;;  %107 = vrot.lane.b32.xlu1 %v85_v5, %s1014_s8 }
  0x21   :  { %820 = vmatprep.mubr.f32.mxu1 %v236_v16  ;;  %v244_v16 = vand.u32 4294901760, %v1142_v4 }
  0x23   :  { %v245_v27 = vsub.f32 %v1142_v4, %v244_v16 }
  0x24   :  { %120 = vrot.lane.b32.xlu0 %v60_v6, %s1015_s12  ;;  %122 = vrot.lane.b32.xlu1 %v119_v8, %s1015_s12 }
  0x28   :  { %128 = vrot.lane.b32.xlu0 %v127_v12, %s1015_s12  ;;  %130 = vrot.lane.b32.xlu1 %v764_v1, %s1015_s12 }
  0x2c   :  { %135 = vrot.lane.b32.xlu0 %v134_v15, %s1015_s12  ;;  %137 = vrot.lane.b32.xlu1 %v765_v0, %s1015_s12 }
  0x30   :  { %141 = vrot.lane.b32.xlu0 %v766_v3, %s1015_s12  ;;  %143 = vrot.lane.b32.xlu1 %v85_v5, %s1015_s12 }
  0x34   :  { %719 = vperm.xlu0 %954, %v715_v18   ;;  %724 = vperm.xlu1 %955, %v716_v19  }
  0x38   :  { %738 = vperm.xlu0 %954, %v730_v23   ;;  %733 = vperm.xlu1 %955, %v729_v24  }
  0x3c   :  { %710 = vrot.lane.b32.xlu0 %v705_v22, %s1015_s12  ;;  %708 = vrot.lane.b32.xlu1 %v707_v25, %s1015_s12 }
  0x86   :  { %v77_v29 = vpop.permute.xlu0 %76  ;;  %v98_v30 = vpop.permute.xlu1 %97 }
  0x8a   :  { %v87_v33 = vpop.permute.xlu0 %86  ;;  %v100_v34 = vpop.permute.xlu1 %99 }
  0x8b   :  { %v102_v36 = vsel %vm101_vm1, %v98_v30, %v100_v34 }
  0x8c   :  { %v104_v37 = vsel %vm1100_vm2, %v102_v36, 0.0  ;;  %v246_v36 = vand.u32 4294901760, %v245_v27 }
  0x8d   :  { %v116_v41 = vrot.slane %v104_v37, 4 }
  0x8e   :  { %v79_v39 = vpop.permute.xlu0 %78  ;;  %v89_v40 = vpop.permute.xlu1 %88 }
  0x8f   :  { %v81_v42 = vsel %vm80_vm4, %v77_v29, %v79_v39  ;;  %v90_v43 = vsel %vm80_vm4, %v87_v33, %v89_v40 }
  0x90   :  { %v83_v45 = vsel %vm1104_vm3, %v81_v42, 0.0  ;;  %v92_v46 = vsel %vm1104_vm3, %v90_v43, 0.0 }
  0x91   :  { %v113_v47 = vrot.slane %v83_v45, 4  ;;  %v148_v48 = vsel %vm146_vm6, %v92_v46, %v116_v41 }
  0x92   :  { %v106_v49 = vpop.permute.xlu0 %105  ;;  %v108_v50 = vpop.permute.xlu1 %107  ;;  %v166_v54 = vand.u32 4294901760, %v148_v48 }
  0x93   :  { %v147_v52 = vsel %vm146_vm6, %v71_v44, %v113_v47  ;;  %v109_v2 = vsel %vm101_vm1, %v106_v49, %v108_v50 }
  0x94   :  { %v163_v53 = vand.u32 4294901760, %v147_v52  ;;  %v1135_v63 = vsub.f32 %v148_v48, %v166_v54  ;;  %v111_v9 = vsel %vm1100_vm2, %v109_v2, 0.0 }
  0x96   :  { %v1125_v56 = vpack.c.bf16 %v166_v54, %v163_v53  ;;  %v121_v57 = vpop.permute.xlu0 %120  ;;  %v123_v58 = vpop.permute.xlu1 %122  ;;  %v1131_v60 = vsub.f32 %v147_v52, %v163_v53  ;;  %v262_v14 = vand.u32 4294901760, %v1135_v63 }
  0x97   :  { %v125_v0 = vsel %vm124_vm7, %v121_v57, %v123_v58 }
  0x98   :  { %889 = vmatprep.subr.bf16.mxu1 %v1125_v56  ;;  %913 = vmatprep.subr.bf16.mxu0 %v1125_v56  ;;  %v255_v6 = vand.u32 4294901760, %v1131_v60  ;;  %v263_v25 = vsub.f32 %v1135_v63, %v262_v14  ;;  %v904_v45 = vpack.c.bf16 %v1135_v63, %v1131_v60 }
  0x99   :  { %891 = vmatpush3.bf16.msra.mxu1 %v1125_v56  ;;  %915 = vmatpush3.bf16.msra.mxu0 %v1125_v56 }
  0x9a   :  { %v129_v61 = vpop.permute.xlu0 %128  ;;  %v131_v62 = vpop.permute.xlu1 %130  ;;  %v256_v18 = vsub.f32 %v1131_v60, %v255_v6  ;;  %v264_v33 = vand.u32 4294901760, %v263_v25  ;;  %v920_v35 = vpack.c.bf16 %v262_v14, %v255_v6 }
  0x9b   :  { %v132_v1 = vsel %vm124_vm7, %v129_v61, %v131_v62 }
  0x9c   :  { %v149_v3 = vsel %vm146_vm6, %v125_v0, %v132_v1  ;;  %v257_v29 = vand.u32 4294901760, %v256_v18 }
  0x9d   :  { %v169_v5 = vand.u32 4294901760, %v149_v3 }
  0x9e   :  { %v136_v7 = vpop.permute.xlu0 %135  ;;  %v138_v8 = vpop.permute.xlu1 %137  ;;  %v896_v37 = vpack.c.bf16 %v264_v33, %v257_v29 }
  0x9f   :  { %v268_v12 = vsub.f32 %v149_v3, %v169_v5  ;;  %v139_v13 = vsel %vm124_vm7, %v136_v7, %v138_v8 }
  0xa0   :  { %v150_v15 = vsel %vm146_vm6, %v111_v9, %v139_v13 }
  0xa1   :  { %v172_v17 = vand.u32 4294901760, %v150_v15  ;;  %v269_v19 = vand.u32 4294901760, %v268_v12 }
  0xa2   :  { %v142_v20 = vpop.permute.xlu0 %141  ;;  %v144_v21 = vpop.permute.xlu1 %143 }
  0xa3   :  { %v892_v22 = vpack.c.bf16 %v172_v17, %v169_v5  ;;  %v275_v23 = vsub.f32 %v150_v15, %v172_v17  ;;  %v145_v24 = vsel %vm124_vm7, %v142_v20, %v144_v21  ;;  %v270_v30 = vsub.f32 %v268_v12, %v269_v19 }
  0xa4   :  { %v160_v26 = vsel %vm146_vm6, %v145_v24, 0 }
  0xa5   :  { %v175_v28 = vand.u32 4294901760, %v160_v26  ;;  %893 = vmatprep.subr.bf16.mxu1 %v892_v22  ;;  %917 = vmatprep.subr.bf16.mxu0 %v892_v22  ;;  %v276_v31 = vand.u32 4294901760, %v275_v23  ;;  %v271_v38 = vand.u32 4294901760, %v270_v30  ;;  %v908_v46 = vpack.c.bf16 %v275_v23, %v268_v12 }
  0xa6   :  { %895 = vmatpush3.bf16.msra.mxu1 %v892_v22  ;;  %919 = vmatpush3.bf16.msra.mxu0 %v892_v22 }
  0xa7   :  { %v282_v32 = vsub.f32 %v160_v26, %v175_v28  ;;  %818 = vmatprep.subr.mxu1 %v175_v28  ;;  %857 = vmatprep.subr.mxu0 %v175_v28  ;;  %v277_v34 = vsub.f32 %v275_v23, %v276_v31  ;;  %v924_v42 = vpack.c.bf16 %v276_v31, %v269_v19 }
  0xa9   :  { %v278_v39 = vand.u32 4294901760, %v277_v34  ;;  %v283_v40 = vand.u32 4294901760, %v282_v32 }
  0xaa   :  { %819 = vmatpush3.msra.mxu1 %v175_v28  ;;  %858 = vmatpush3.msra.mxu0 %v175_v28 }
  0xab   :  { %897 = vmatprep.subr.bf16.mxu1 %v896_v37  ;;  %921 = vmatprep.subr.bf16.mxu0 %v920_v35  ;;  %v900_v41 = vpack.c.bf16 %v278_v39, %v271_v38  ;;  %v284_v43 = vsub.f32 %v282_v32, %v283_v40 }
  0xac   :  { %821 = vmatmul.mubr.f32.vlgmr.msra.gmra.mrb[0].mxu1 %v246_v36  ;;  %860 = vmatmul.mubr.f32.vlgmr.msra.gmra.mrb[0].mxu0 %v244_v16 }
  0xad   :  { %899 = vmatpush3.bf16.msra.mxu1 %v896_v37  ;;  %923 = vmatpush3.bf16.msra.mxu0 %v920_v35  ;;  %v285_v44 = vand.u32 4294901760, %v284_v43 }
  0xae   :  { %901 = vmatprep.subr.bf16.mxu1 %v900_v41  ;;  %925 = vmatprep.subr.bf16.mxu0 %v924_v42 }
  0xaf   :  { %833 = vmatprep.mubr.f32.mxu1 %v1071_v10  ;;  %872 = vmatprep.mubr.f32.mxu0 %v1071_v10 }
  0xb1   :  { %903 = vmatpush3.bf16.msra.mxu1 %v900_v41  ;;  %927 = vmatpush3.bf16.msra.mxu0 %v924_v42 }
  0xb2   :  { %831 = vmatprep.subr.mxu1 %v285_v44  ;;  %870 = vmatprep.subr.mxu0 %v283_v40 }
  0xb3   :  { %v720_v47 = vpop.permute.xlu0 %719  ;;  %v725_v48 = vpop.permute.xlu1 %724 }
  0xb5   :  { %832 = vmatpush3.msra.mxu1 %v285_v44  ;;  %871 = vmatpush3.msra.mxu0 %v283_v40 }
  0xb6   :  { %905 = vmatprep.subr.bf16.mxu1 %v904_v45  ;;  %929 = vmatprep.subr.bf16.mxu0 %v1125_v56 }
  0xb7   :  { %834 = vmatmul.mubr.f32.vlgmr.msra.gmra.mrb[0].mxu1 %v1129_v59  ;;  %873 = vmatmul.mubr.f32.vlgmr.msra.gmra.mrb[0].mxu0 %v1129_v59  ;;  %v739_v49 = vpop.permute.xlu0 %738  ;;  %v734_v50 = vpop.permute.xlu1 %733 }
  0xb8   :  { %907 = vmatpush3.bf16.msra.mxu1 %v904_v45  ;;  %931 = vmatpush3.bf16.msra.mxu0 %v1125_v56 }
  0xb9   :  { %909 = vmatprep.subr.bf16.mxu1 %v908_v46  ;;  %933 = vmatprep.subr.bf16.mxu0 %v892_v22 }
  0xba   :  { %846 = vmatprep.mubr.f32.mxu1 %v1074_v11  ;;  %885 = vmatprep.mubr.f32.mxu0 %v1071_v10 }
  0xbb   :  { %v711_v51 = vpop.permute.xlu0 %710  ;;  %v709_v52 = vpop.permute.xlu1 %708 }
  0xbc   :  { %911 = vmatpush3.bf16.msra.mxu1 %v908_v46  ;;  %935 = vmatpush3.bf16.msra.mxu0 %v892_v22  ;;  %v712_v10 = vsel %vm124_vm7, %v709_v52, %v711_v51 }
  0xbd   :  { %844 = vmatprep.subr.mxu1 %v282_v32  ;;  %883 = vmatprep.subr.mxu0 %v175_v28 }
  0xc0   :  { %845 = vmatpush3.msra.mxu1 %v282_v32  ;;  %884 = vmatpush3.msra.mxu0 %v175_v28 }
  0xc1   :  { %847 = vmatmul.mubr.f32.vlgmr.msra.gmra.mrb[0].mxu1 %v1142_v4  ;;  %886 = vmatmul.mubr.f32.vlgmr.msra.gmra.mrb[0].mxu0 %v1129_v59 }
 0x194   :  { %v848_v53 = vpop.f32.mrb[0].mxu1  ;;  %v887_v11 = vpop.f32.mrb[0].mxu0 }
 0x195   :  { %v936_v54 = vadd.f32 %v887_v11, %v848_v53  ;;  %v432_v55 = vpop.f32.mrb[1].mxu1  ;;  %v693_v56 = vpop.f32.mrb[1].mxu0 }
 0x196   :  { %v937_v57 = vadd.f32 %v693_v56, %v432_v55 }
 0x197   :  { %v714_v58 = vsel %vm146_vm6, %v936_v54, %v712_v10 }
 0x198   :  { %v727_v60 = vmul.f32 %v937_v57, %v720_v47  ;;  %v728_v61 = vmul.f32 %v725_v48, %v714_v58 }
 0x19a   :  { %v741_v59 = vadd.f32 %v734_v50, %v727_v60  ;;  %v742_v62 = vadd.f32 %v739_v49, %v728_v61 }
 0x19c   :  { %v743_v63 = vmax.f32 %v741_v59, 0.0  ;;  %v744_v0 = vmax.f32 %v742_v62, 0.0 }
 0x19e   :  { %745 = vst [vmem:[#allocation5] sm:$0xff] %v743_v63  ;;  %746 = vst [vmem:[#allocation5 + $0x8] sm:$0xff] %v744_v0 }
 0x19f   :  { %995 = shalt.err (!%p992_p12)
}
 0x1a0   :  { %s996_s27 = scalar_lea.hbm %s1189_s4, 256 }
 0x1a1   :  { %p997_p13 = scmp.ne.s32.totalorder %s1189_s4, %s996_s27  ;;  %p1000_p0 = scmp.lt.u32.totalorder %s996_s27, %s1189_s4 }
 0x1a3   :  { %p1002_p1 = pnand %p1000_p0, %p997_p13 }
 0x1a5   :  { %1005 = shalt.err (!%p1002_p1)
}
 0x1a6   :  { %758 = dma.vmem_to_hbm [thread:$0]  %s753_s21, 256, %s1189_s4, [#allocation4], %s1011_s25, %s1011_s25, %s1012_s26  }
 0x1a7   :  { %1008 = dma.done.wait [#allocation4], 256  }
 0x1a8   :  { %1009 = vsyncadd [#allocation4], 4294967040 }
 0x1a9   :  { %762 = vsyncpa [#allocation3], 1 }
 0x1aa   :  { %763 = vsyncpa [#allocation4], 1 }

</bundles_post_ra>
